<compile_context>
chip_gen: v7x
topology: tpu7x:2x2x1
jax: 0.10.0
libtpu: 0.0.40
codegen_flags: <defaults>
</compile_context>

<pallas_src>
import functools

import jax
import jax.numpy as jnp
from jax import lax
from jax.experimental import pallas as pl
from jax.experimental.pallas import tpu as pltpu


# -----------------------------------------------------------------------------
# Kernel: 3x3 conv (padding=1) + bias for one block of image rows, as a single
#         lane-dense MXU matmul against block-Toeplitz weights, plus lane-dense
#         partial BN statistics.
# -----------------------------------------------------------------------------
def conv_kernel(x_ref, w_ref, b_ref, y_ref, part_ref, *, img_rows):
    # x_ref:    (1, M, W*Cin)       M rows of activations (M = H or N*H)
    # w_ref:    (3*W*Cin, W*Cout)   block-Toeplitz weights (kh stacked on K)
    # b_ref:    (1, W*Cout)         lane-tiled bias
    # y_ref:    (1, M, W*Cout)      lane-dense conv output
    # part_ref: (1, 1, 2*W*Cout)    lane-dense [sum | sum_sq] over the M rows
    x = x_ref[0]                                          # (M, WCin)
    M, WCin = x.shape

    zrow = jnp.zeros((1, WCin), x.dtype)
    # h-direction taps: row r -> x[r-1] (kh=0) and x[r+1] (kh=2); w-direction
    # padding is already absorbed into the Toeplitz weights.
    x_up = jnp.concatenate([zrow, x[:-1, :]], axis=0)
    x_dn = jnp.concatenate([x[1:, :], zrow], axis=0)

    if M != img_rows:
        # Folded batch (M = N*H): zero the rows that would leak across the
        # per-image boundaries.
        rows = lax.broadcasted_iota(jnp.int32, (M, WCin), 0)
        x_up = jnp.where((rows % img_rows) != 0, x_up, 0.0)
        x_dn = jnp.where((rows % img_rows) != img_rows - 1, x_dn, 0.0)

    # Fuse the kh reduction into the MXU K dimension: one (M, 3*WCin)@(3*WCin, WCout)
    # matmul instead of 3 dots + 2 VPU adds.
    lhs = jnp.concatenate([x_up, x, x_dn], axis=1)        # (M, 3*WCin)
    acc = jnp.dot(lhs, w_ref[...], preferred_element_type=jnp.float32)
    acc = acc + b_ref[0]

    y_ref[0] = acc                                        # full-width lane-dense store

    # Per-block partial BN stats, packed lane-dense into one (1, 2*W*Cout) row.
    s1 = jnp.sum(acc, axis=0, keepdims=True)              # (1, WCout)
    s2 = jnp.sum(acc * acc, axis=0, keepdims=True)        # (1, WCout)
    part_ref[0] = jnp.concatenate([s1, s2], axis=1)       # (1, 2*WCout)


def _default_fold_batch():
    # v7x has 2 TensorCores per chip -> keep the batch grid axis "parallel" so
    # each core takes an image.  Single-TC chips (v5e/v6e/...) do better with
    # the batch folded into the matmul M dimension (one grid step).
    try:
        kind = jax.devices()[0].device_kind.lower()
    except Exception:
        return True
    return "v7" not in kind


# -----------------------------------------------------------------------------
# Wrapper: ConvBlock.forward semantics (NCHW in / NCHW out).
# -----------------------------------------------------------------------------
def conv_block_forward(x_nchw, weight_oihw, bias, gamma, beta, eps=1e-5,
                       fold_batch=None):
    N, Cin, H, W = x_nchw.shape
    Cout = weight_oihw.shape[0]
    WCin = W * Cin
    WCout = W * Cout

    if fold_batch is None:
        fold_batch = _default_fold_batch()

    # ---- glue: NCHW -> (N, H, W*Cin) lane-dense activation layout (XLA).
    x_flat = jnp.transpose(x_nchw, (0, 2, 3, 1)).astype(jnp.float32)
    x_flat = x_flat.reshape(N, H, WCin)

    # ---- block-Toeplitz weights (built once, weight-sized, absorbs w padding):
    #      toep[kh*WCin + w_in*Cin + ci, w*Cout + co] = weight[co, ci, kh, w_in-w+1]
    #      when 0 <= w_in - w + 1 <= 2, else 0.
    wt = jnp.transpose(weight_oihw, (2, 3, 1, 0)).astype(jnp.float32)  # (3,3,Cin,Cout)
    w_in = jnp.arange(W)[:, None]
    w_out = jnp.arange(W)[None, :]
    kw_idx = w_in - w_out + 1                                          # (W, W)
    valid = ((kw_idx >= 0) & (kw_idx <= 2)).astype(jnp.float32)
    toep = wt[:, jnp.clip(kw_idx, 0, 2), :, :]                         # (3, W, W, Cin, Cout)
    toep = toep * valid[None, :, :, None, None]
    toep = jnp.transpose(toep, (0, 1, 3, 2, 4)).reshape(3 * WCin, WCout)

    bias_lane = jnp.tile(bias.astype(jnp.float32), W).reshape(1, WCout)

    if fold_batch:
        # Single grid step; batch folded into matmul M dimension.
        x_in = x_flat.reshape(1, N * H, WCin)
        n_blocks, rows_per_block = 1, N * H
        dim_sem = ("arbitrary",)
    else:
        # One image per grid step; axis parallel so both v7x TCs are used.
        x_in = x_flat
        n_blocks, rows_per_block = N, H
        dim_sem = ("parallel",)

    flops = 2 * N * H * (3 * WCin) * WCout
    bytes_accessed = 4 * (N * H * WCin + 3 * WCin * WCout + WCout
                          + N * H * WCout + n_blocks * 2 * WCout)

    kernel = functools.partial(conv_kernel, img_rows=H)

    y, part = pl.pallas_call(
        kernel,
        out_shape=(
            jax.ShapeDtypeStruct((n_blocks, rows_per_block, WCout), jnp.float32),
            jax.ShapeDtypeStruct((n_blocks, 1, 2 * WCout), jnp.float32),
        ),
        grid=(n_blocks,),
        in_specs=[
            pl.BlockSpec((1, rows_per_block, WCin), lambda n: (n, 0, 0)),
            pl.BlockSpec((3 * WCin, WCout), lambda n: (0, 0)),
            pl.BlockSpec((1, WCout), lambda n: (0, 0)),
        ],
        out_specs=(
            pl.BlockSpec((1, rows_per_block, WCout), lambda n: (n, 0, 0)),
            pl.BlockSpec((1, 1, 2 * WCout), lambda n: (n, 0, 0)),
        ),
        compiler_params=pltpu.CompilerParams(dimension_semantics=dim_sem),
        cost_estimate=pl.CostEstimate(flops=flops, transcendentals=0,
                                      bytes_accessed=bytes_accessed),
    )(x_in, toep, bias_lane)

    # ---- BatchNorm2d training-mode batch statistics (biased), reduced from the
    #      lane-dense per-block partial sums (tiny tensor, stays in XLA).
    tot = part.sum(axis=(0, 1)).reshape(2, W, Cout).sum(axis=1)        # (2, Cout)
    count = jnp.float32(N * H * W)
    mean = tot[0] / count
    var = jnp.maximum(tot[1] / count - mean * mean, 0.0)               # clamp >= 0
    inv_std = lax.rsqrt(var + eps)
    scale = gamma.astype(jnp.float32) * inv_std
    shift = beta.astype(jnp.float32) - mean * scale

    # ---- BN affine + ReLU in plain jnp: XLA fuses it with the NHWC->NCHW
    #      transpose, so there is no second kernel launch / HBM round-trip.
    y_nhwc = y.reshape(N, H, W, Cout)
    out = jnp.maximum(y_nhwc * scale[None, None, None, :]
                      + shift[None, None, None, :], 0.0)
    return jnp.transpose(out, (0, 3, 1, 2))


# -----------------------------------------------------------------------------
# Pure-JAX reference (same semantics as the PyTorch module, training mode).
# -----------------------------------------------------------------------------
def conv_block_reference(x, weight, bias, gamma, beta, eps=1e-5):
    conv = lax.conv_general_dilated(
        x, weight, window_strides=(1, 1), padding="SAME",
        dimension_numbers=("NCHW", "OIHW", "NCHW"),
        precision=lax.Precision.HIGHEST)
    conv = conv + bias[None, :, None, None]
    mean = jnp.mean(conv, axis=(0, 2, 3), keepdims=True)
    var = jnp.mean((conv - mean) ** 2, axis=(0, 2, 3), keepdims=True)  # biased
    xhat = (conv - mean) / jnp.sqrt(var + eps)
    out = xhat * gamma[None, :, None, None] + beta[None, :, None, None]
    return jnp.maximum(out, 0.0)


if __name__ == "__main__":
    # ConvBlock(in_channels=4, out_channels=8), input NCHW = (2, 4, 16, 16)
    N, Cin, Cout, H, W = 2, 4, 8, 16, 16

    key = jax.random.PRNGKey(0)
    kx, kw, kb, kg, kbt = jax.random.split(key, 5)

    x = jax.random.normal(kx, (N, Cin, H, W), dtype=jnp.float32)
    weight = 0.1 * jax.random.normal(kw, (Cout, Cin, 3, 3), dtype=jnp.float32)
    bias = 0.1 * jax.random.normal(kb, (Cout,), dtype=jnp.float32)
    gamma = 1.0 + 0.1 * jax.random.normal(kg, (Cout,), dtype=jnp.float32)
    beta = 0.1 * jax.random.normal(kbt, (Cout,), dtype=jnp.float32)

    ref = jax.block_until_ready(conv_block_reference(x, weight, bias, gamma, beta))

    # Exercise both grid layouts (default for this chip first, then the other).
    default_fold = _default_fold_batch()
    for fold in (default_fold, not default_fold):
        fwd = jax.jit(functools.partial(conv_block_forward, fold_batch=fold))
        out = jax.block_until_ready(fwd(x, weight, bias, gamma, beta))
        assert out.shape == (N, Cout, H, W)
        err = jnp.max(jnp.abs(out - ref))
        assert jnp.allclose(out, ref, atol=2e-3, rtol=2e-3), (
            f"fold_batch={fold}: max abs err = {err}")

    print("KERNEL_OK")
</pallas_src>

<mosaic_0001>
module attributes {stable_mosaic.version = 11 : i64} {
  func.func @conv_kernel(%arg0: i32, %arg1: memref<1x32x64xf32, #tpu.memory_space<vmem>>, %arg2: memref<192x128xf32, #tpu.memory_space<vmem>>, %arg3: memref<1x128xf32, #tpu.memory_space<vmem>>, %arg4: memref<1x32x128xf32, #tpu.memory_space<vmem>>, %arg5: memref<1x1x256xf32, #tpu.memory_space<vmem>>) attributes {dimension_semantics = [#tpu.dimension_semantics<arbitrary>], iteration_bounds = array<i64: 1>, scalar_prefetch = 0 : i64, scratch_operands = 0 : i64, tpu.core_type = #tpu.core_type<tc>, window_params = [{transform_indices = @transform_0, window_bounds = array<i64: 1, 32, 64>}, {pipeline_mode = #tpu.pipeline_mode<synchronous>, transform_indices = @transform_1, window_bounds = array<i64: 192, 128>}, {pipeline_mode = #tpu.pipeline_mode<synchronous>, transform_indices = @transform_2, window_bounds = array<i64: 1, 128>}, {transform_indices = @transform_3, window_bounds = array<i64: 1, 32, 128>}, {transform_indices = @transform_4, window_bounds = array<i64: 1, 1, 256>}]} {
    %c0 = arith.constant 0 : index
    %c0_0 = arith.constant 0 : index
    %c0_1 = arith.constant 0 : index
    %0 = vector.load %arg1[%c0, %c0_0, %c0_1] : memref<1x32x64xf32, #tpu.memory_space<vmem>>, vector<1x32x64xf32>
    %1 = vector.shape_cast %0 : vector<1x32x64xf32> to vector<32x64xf32>
    %cst = arith.constant 0.000000e+00 : f32
    %2 = vector.broadcast %cst : f32 to vector<1x64xf32>
    %3 = vector.extract_strided_slice %1 {offsets = [0, 0], sizes = [31, 64], strides = [1, 1]} : vector<32x64xf32> to vector<31x64xf32>
    %4 = tpu.concatenate %2, %3 in 0 : vector<1x64xf32>, vector<31x64xf32> -> vector<32x64xf32>
    %5 = vector.extract_strided_slice %1 {offsets = [1, 0], sizes = [31, 64], strides = [1, 1]} : vector<32x64xf32> to vector<31x64xf32>
    %6 = tpu.concatenate %5, %2 in 0 : vector<31x64xf32>, vector<1x64xf32> -> vector<32x64xf32>
    %7 = tpu.iota {dimensions = array<i32: 0>} : vector<32x64xi32>
    %c16_i32 = arith.constant 16 : i32
    %c0_i32 = arith.constant 0 : i32
    %8 = arith.cmpi eq, %c16_i32, %c0_i32 : i32
    %c1_i32 = arith.constant 1 : i32
    %9 = arith.select %8, %c1_i32, %c16_i32 : i32
    %10 = vector.broadcast %9 : i32 to vector<32x64xi32>
    %11 = arith.remsi %7, %10 : vector<32x64xi32>
    %c0_i32_2 = arith.constant 0 : i32
    %12 = vector.broadcast %c0_i32_2 : i32 to vector<32x64xi32>
    %13 = arith.cmpi ne, %11, %12 : vector<32x64xi32>
    %c0_i32_3 = arith.constant 0 : i32
    %14 = vector.broadcast %c0_i32_3 : i32 to vector<32x64xi32>
    %15 = arith.cmpi slt, %11, %14 : vector<32x64xi32>
    %c0_i32_4 = arith.constant 0 : i32
    %16 = arith.cmpi slt, %9, %c0_i32_4 : i32
    %17 = vector.broadcast %16 : i1 to vector<32x64xi1>
    %18 = vector.broadcast %17 : vector<32x64xi1> to vector<32x64xi1>
    %19 = arith.xori %15, %18 : vector<32x64xi1>
    %20 = arith.andi %19, %13 : vector<32x64xi1>
    %21 = vector.broadcast %9 : i32 to vector<32x64xi32>
    %22 = arith.addi %11, %21 : vector<32x64xi32>
    %23 = arith.select %20, %22, %11 : vector<32x64xi1>, vector<32x64xi32>
    %c0_i32_5 = arith.constant 0 : i32
    %24 = vector.broadcast %c0_i32_5 : i32 to vector<32x64xi32>
    %25 = arith.cmpi ne, %23, %24 : vector<32x64xi32>
    %cst_6 = arith.constant 0.000000e+00 : f32
    %26 = vector.broadcast %cst_6 : f32 to vector<32x64xf32>
    %27 = arith.select %25, %4, %26 : vector<32x64xi1>, vector<32x64xf32>
    %c16_i32_7 = arith.constant 16 : i32
    %c0_i32_8 = arith.constant 0 : i32
    %28 = arith.cmpi eq, %c16_i32_7, %c0_i32_8 : i32
    %c1_i32_9 = arith.constant 1 : i32
    %29 = arith.select %28, %c1_i32_9, %c16_i32_7 : i32
    %30 = vector.broadcast %29 : i32 to vector<32x64xi32>
    %31 = arith.remsi %7, %30 : vector<32x64xi32>
    %c0_i32_10 = arith.constant 0 : i32
    %32 = vector.broadcast %c0_i32_10 : i32 to vector<32x64xi32>
    %33 = arith.cmpi ne, %31, %32 : vector<32x64xi32>
    %c0_i32_11 = arith.constant 0 : i32
    %34 = vector.broadcast %c0_i32_11 : i32 to vector<32x64xi32>
    %35 = arith.cmpi slt, %31, %34 : vector<32x64xi32>
    %c0_i32_12 = arith.constant 0 : i32
    %36 = arith.cmpi slt, %29, %c0_i32_12 : i32
    %37 = vector.broadcast %36 : i1 to vector<32x64xi1>
    %38 = vector.broadcast %37 : vector<32x64xi1> to vector<32x64xi1>
    %39 = arith.xori %35, %38 : vector<32x64xi1>
    %40 = arith.andi %39, %33 : vector<32x64xi1>
    %41 = vector.broadcast %29 : i32 to vector<32x64xi32>
    %42 = arith.addi %31, %41 : vector<32x64xi32>
    %43 = arith.select %40, %42, %31 : vector<32x64xi1>, vector<32x64xi32>
    %c15_i32 = arith.constant 15 : i32
    %44 = vector.broadcast %c15_i32 : i32 to vector<32x64xi32>
    %45 = arith.cmpi ne, %43, %44 : vector<32x64xi32>
    %cst_13 = arith.constant 0.000000e+00 : f32
    %46 = vector.broadcast %cst_13 : f32 to vector<32x64xf32>
    %47 = arith.select %45, %6, %46 : vector<32x64xi1>, vector<32x64xf32>
    %48 = tpu.concatenate %27, %1, %47 in 1 : vector<32x64xf32>, vector<32x64xf32>, vector<32x64xf32> -> vector<32x192xf32>
    %c0_14 = arith.constant 0 : index
    %c0_15 = arith.constant 0 : index
    %49 = vector.load %arg2[%c0_14, %c0_15] : memref<192x128xf32, #tpu.memory_space<vmem>>, vector<192x128xf32>
    %cst_16 = arith.constant dense<0.000000e+00> : vector<32x128xf32>
    %50 = tpu.matmul %48, %49, %cst_16 {dimension_numbers = #tpu.dot_dimension_numbers<[1], [0], [0], [1], [0, 0, 1, 1], [], []>} : vector<32x192xf32>, vector<192x128xf32>, vector<32x128xf32> -> vector<32x128xf32>
    %c0_17 = arith.constant 0 : index
    %c0_18 = arith.constant 0 : index
    %51 = vector.load %arg3[%c0_17, %c0_18] : memref<1x128xf32, #tpu.memory_space<vmem>>, vector<1x128xf32>
    %52 = vector.shape_cast %51 : vector<1x128xf32> to vector<128xf32>
    %53 = vector.shape_cast %52 : vector<128xf32> to vector<1x128xf32>
    %54 = vector.broadcast %53 : vector<1x128xf32> to vector<32x128xf32>
    %55 = arith.addf %50, %54 : vector<32x128xf32>
    %c0_19 = arith.constant 0 : index
    %c0_20 = arith.constant 0 : index
    %c0_21 = arith.constant 0 : index
    %56 = vector.load %arg4[%c0_19, %c0_20, %c0_21] : memref<1x32x128xf32, #tpu.memory_space<vmem>>, vector<1x32x128xf32>
    %57 = vector.shape_cast %56 : vector<1x32x128xf32> to vector<32x128xf32>
    %58 = vector.shape_cast %55 : vector<32x128xf32> to vector<1x32x128xf32>
    tpu.vector_store %arg4[%c0_19, %c0_20, %c0_21], %58 {strides = array<i32>} : memref<1x32x128xf32, #tpu.memory_space<vmem>>, vector<1x32x128xf32>,
    %cst_22 = arith.constant dense<0.000000e+00> : vector<128xf32>
    %59 = vector.multi_reduction <add>, %55, %cst_22 [0] : vector<32x128xf32> to vector<128xf32>
    %60 = vector.shape_cast %59 : vector<128xf32> to vector<1x128xf32>
    %61 = arith.mulf %55, %55 : vector<32x128xf32>
    %cst_23 = arith.constant dense<0.000000e+00> : vector<128xf32>
    %62 = vector.multi_reduction <add>, %61, %cst_23 [0] : vector<32x128xf32> to vector<128xf32>
    %63 = vector.shape_cast %62 : vector<128xf32> to vector<1x128xf32>
    %64 = tpu.concatenate %60, %63 in 1 : vector<1x128xf32>, vector<1x128xf32> -> vector<1x256xf32>
    %c0_24 = arith.constant 0 : index
    %c0_25 = arith.constant 0 : index
    %c0_26 = arith.constant 0 : index
    %65 = vector.load %arg5[%c0_24, %c0_25, %c0_26] : memref<1x1x256xf32, #tpu.memory_space<vmem>>, vector<1x1x256xf32>
    %66 = vector.shape_cast %65 : vector<1x1x256xf32> to vector<1x256xf32>
    %67 = vector.shape_cast %64 : vector<1x256xf32> to vector<1x1x256xf32>
    tpu.vector_store %arg5[%c0_24, %c0_25, %c0_26], %67 {strides = array<i32>} : memref<1x1x256xf32, #tpu.memory_space<vmem>>, vector<1x1x256xf32>,
    return
  }
  func.func @transform_0(%arg0: i32) -> (i32, i32, i32) {
    %c0_i32 = arith.constant 0 : i32
    %c0_i32_0 = arith.constant 0 : i32
    %c0_i32_1 = arith.constant 0 : i32
    return %arg0, %c0_i32, %c0_i32_0 : i32, i32, i32
  }
  func.func @transform_1(%arg0: i32) -> (i32, i32) {
    %c0_i32 = arith.constant 0 : i32
    %c0_i32_0 = arith.constant 0 : i32
    %c0_i32_1 = arith.constant 0 : i32
    return %c0_i32, %c0_i32_0 : i32, i32
  }
  func.func @transform_2(%arg0: i32) -> (i32, i32) {
    %c0_i32 = arith.constant 0 : i32
    %c0_i32_0 = arith.constant 0 : i32
    %c0_i32_1 = arith.constant 0 : i32
    return %c0_i32, %c0_i32_0 : i32, i32
  }
  func.func @transform_3(%arg0: i32) -> (i32, i32, i32) {
    %c0_i32 = arith.constant 0 : i32
    %c0_i32_0 = arith.constant 0 : i32
    %c0_i32_1 = arith.constant 0 : i32
    return %arg0, %c0_i32, %c0_i32_0 : i32, i32, i32
  }
  func.func @transform_4(%arg0: i32) -> (i32, i32, i32) {
    %c0_i32 = arith.constant 0 : i32
    %c0_i32_0 = arith.constant 0 : i32
    %c0_i32_1 = arith.constant 0 : i32
    return %arg0, %c0_i32, %c0_i32_0 : i32, i32, i32
  }
}

</mosaic_0001>

<bundles_post_ra>
// kernel: tile.8
= control target key start
LH: loop header
LB: loop body
LE: loop exit
PB: predicated region body
PF: predicated region fallthrough
CT: control target
= control target key end

     0   :  { %s28_s0 = inlined_call_operand.vmem [shape: f32[8], index: 0, kind: input, shape index: {}]   ;;  %s29_s1 = inlined_call_operand.vmem [shape: f32[16,8], index: 1, kind: output, shape index: {}]  }
   0x1   :  { %v4_v0 = vld [vmem:[%s28_s0] ss:$0 sm:$0xff] }
   0x2   :  { %5 = vst [vmem:[%s29_s1] sm:$0xff] %v4_v0  ;;  %8 = vst [vmem:[%s29_s1 + $0x8] sm:$0xff] %v4_v0 }

// kernel: tile.9
= control target key start
LH: loop header
LB: loop body
LE: loop exit
PB: predicated region body
PF: predicated region fallthrough
CT: control target
= control target key end

     0   :  { %s131_s10 = smov 120   ;;  %s132_s11 = smov 104   ;;  %vm3_vm0 = vcmask 64512   ;;  %vm9_vm1 = vcmask 1048512   ;;  %vm15_vm2 = vcmask 982912   ;;  %vm21_vm3 = vcmask 917312   ;;  %s207_s0 = inlined_call_operand.vmem [shape: f32[16,8], index: 0, kind: input, shape index: {}]   ;;  %s208_s1 = inlined_call_operand.vmem [shape: f32[1,128], index: 1, kind: output, shape index: {}]  }
   0x1   :  { %v101_v0 = vld [vmem:[%s207_s0 + $0xf] sm:$0x1]   ;;  %v103_v1 = vld [vmem:[%s207_s0 + $0xd] sm:$0x1]   ;;  %v102_v2 = vld [vmem:[%s207_s0 + $0xe] sm:$0x1]  }
   0x2   :  { %7 = vrot.lane.b32.xlu0 %v101_v0, %s131_s10  ;;  %19 = vrot.lane.b32.xlu1 %v103_v1, %s132_s11  ;;  %v104_v3 = vld [vmem:[%s207_s0 + $0xc] sm:$0x1]   ;;  %s133_s16 = smov 112   ;;  %s134_s17 = smov 96   ;;  %v105_v4 = vld [vmem:[%s207_s0 + $0xb] sm:$0x1]  }
   0x3   :  { %v106_v5 = vld [vmem:[%s207_s0 + $0xa] sm:$0x1]   ;;  %v2_v6 = vld [vmem:[%s207_s0] sm:$0x1]   ;;  %s135_s24 = smov 88   ;;  %s136_s25 = smov 80  }
   0x4   :  { %4 = vst.msk [vmem:[#allocation0] sm:$0x1] %vm3_vm0, %v2_v6   ;;  %v107_v7 = vld [vmem:[%s207_s0 + $0x9] sm:$0x1]   ;;  %v108_v8 = vld [vmem:[%s207_s0 + $0x8] sm:$0x1]  }
   0x5   :  { %s137_s30 = smov 72   ;;  %s138_s2 = smov 64   ;;  %v109_v9 = vld [vmem:[%s207_s0 + $0x7] sm:$0x1]   ;;  %v110_v10 = vld [vmem:[%s207_s0 + $0x6] sm:$0x1]  }
   0x6   :  { %13 = vrot.lane.b32.xlu0 %v102_v2, %s133_s16  ;;  %25 = vrot.lane.b32.xlu1 %v104_v3, %s134_s17  ;;  %s139_s7 = smov 56   ;;  %s140_s8 = smov 48   ;;  %v111_v11 = vld [vmem:[%s207_s0 + $0x5] sm:$0x1]   ;;  %v112_v12 = vld [vmem:[%s207_s0 + $0x4] sm:$0x1]  }
   0x7   :  { %s141_s13 = smov 40   ;;  %s142_s14 = smov 32   ;;  %v113_v13 = vld [vmem:[%s207_s0 + $0x3] sm:$0x1]   ;;  %v114_v14 = vld [vmem:[%s207_s0 + $0x2] sm:$0x1]  }
   0x8   :  { %s143_s19 = smov 24   ;;  %s144_s20 = smov 16   ;;  %v115_v15 = vld [vmem:[%s207_s0 + $0x1] sm:$0x1]   ;;  %vm27_vm4 = vcmask 851712   ;;  %vm33_vm5 = vcmask 786112  }
   0x9   :  { %s145_s0 = smov 8   ;;  %vm39_vm6 = vcmask 720512   ;;  %vm45_vm7 = vcmask 654912   ;;  %vm51_vm8 = vcmask 589312   ;;  %vm57_vm9 = vcmask 523712  }
   0xa   :  { %31 = vrot.lane.b32.xlu0 %v105_v4, %s135_s24  ;;  %37 = vrot.lane.b32.xlu1 %v106_v5, %s136_s25  ;;  %vm63_vm10 = vcmask 458112   ;;  %vm69_vm11 = vcmask 392512   ;;  %vm75_vm12 = vcmask 326912   ;;  %vm81_vm13 = vcmask 261312  }
   0xb   :  { %vm87_vm14 = vcmask 195712   ;;  %vm93_vm15 = vcmask 130112  }
   0xe   :  { %43 = vrot.lane.b32.xlu0 %v107_v7, %s137_s30  ;;  %49 = vrot.lane.b32.xlu1 %v108_v8, %s138_s2 }
  0x12   :  { %55 = vrot.lane.b32.xlu0 %v109_v9, %s139_s7  ;;  %61 = vrot.lane.b32.xlu1 %v110_v10, %s140_s8 }
  0x16   :  { %67 = vrot.lane.b32.xlu0 %v111_v11, %s141_s13  ;;  %73 = vrot.lane.b32.xlu1 %v112_v12, %s142_s14 }
  0x1a   :  { %79 = vrot.lane.b32.xlu0 %v113_v13, %s143_s19  ;;  %85 = vrot.lane.b32.xlu1 %v114_v14, %s144_s20 }
  0x1e   :  { %91 = vrot.lane.b32.xlu0 %v115_v15, %s145_s0 }
  0x74   :  { %v8_v16 = vpop.permute.xlu0 %7   ;;  %v20_v17 = vpop.permute.xlu1 %19  }
  0x75   :  { %10 = vst.msk [vmem:[#allocation0] sm:$0x1] %vm9_vm1, %v8_v16  }
  0x78   :  { %v14_v18 = vpop.permute.xlu0 %13   ;;  %v26_v19 = vpop.permute.xlu1 %25  }
  0x79   :  { %16 = vst.msk [vmem:[#allocation0] sm:$0x1] %vm15_vm2, %v14_v18  }
  0x7a   :  { %22 = vst.msk [vmem:[#allocation0] sm:$0x1] %vm21_vm3, %v20_v17  }
  0x7b   :  { %28 = vst.msk [vmem:[#allocation0] sm:$0x1] %vm27_vm4, %v26_v19  }
  0x7c   :  { %v32_v20 = vpop.permute.xlu0 %31   ;;  %v38_v21 = vpop.permute.xlu1 %37  }
  0x7d   :  { %34 = vst.msk [vmem:[#allocation0] sm:$0x1] %vm33_vm5, %v32_v20  }
  0x7e   :  { %40 = vst.msk [vmem:[#allocation0] sm:$0x1] %vm39_vm6, %v38_v21  }
  0x80   :  { %v44_v22 = vpop.permute.xlu0 %43   ;;  %v50_v23 = vpop.permute.xlu1 %49  }
  0x81   :  { %46 = vst.msk [vmem:[#allocation0] sm:$0x1] %vm45_vm7, %v44_v22  }
  0x82   :  { %52 = vst.msk [vmem:[#allocation0] sm:$0x1] %vm51_vm8, %v50_v23  }
  0x84   :  { %v56_v24 = vpop.permute.xlu0 %55   ;;  %v62_v25 = vpop.permute.xlu1 %61  }
  0x85   :  { %58 = vst.msk [vmem:[#allocation0] sm:$0x1] %vm57_vm9, %v56_v24  }
  0x86   :  { %64 = vst.msk [vmem:[#allocation0] sm:$0x1] %vm63_vm10, %v62_v25  }
  0x88   :  { %v68_v26 = vpop.permute.xlu0 %67   ;;  %v74_v27 = vpop.permute.xlu1 %73  }
  0x89   :  { %70 = vst.msk [vmem:[#allocation0] sm:$0x1] %vm69_vm11, %v68_v26  }
  0x8a   :  { %76 = vst.msk [vmem:[#allocation0] sm:$0x1] %vm75_vm12, %v74_v27  }
  0x8c   :  { %v80_v28 = vpop.permute.xlu0 %79   ;;  %v86_v29 = vpop.permute.xlu1 %85  }
  0x8d   :  { %82 = vst.msk [vmem:[#allocation0] sm:$0x1] %vm81_vm13, %v80_v28  }
  0x8e   :  { %88 = vst.msk [vmem:[#allocation0] sm:$0x1] %vm87_vm14, %v86_v29  }
  0x90   :  { %v92_v30 = vpop.permute.xlu0 %91  }
  0x91   :  { %94 = vst.msk [vmem:[#allocation0] sm:$0x1] %vm93_vm15, %v92_v30  }
  0x98   :  { %v98_v31 = vld [vmem:[#allocation0] sm:$0x1] }
  0x99   :  { %100 = vst [vmem:[%s208_s1] sm:$0x1] %v98_v31 }

// kernel: conv_block_forward.1
= control target key start
LH: loop header
LB: loop body
LE: loop exit
PB: predicated region body
PF: predicated region fallthrough
CT: control target
= control target key end

     0   :  { %v394_v3 = vmov 0.0|0.0   ;;  %s395_s21 = smov 64   ;;  %vm37_vm0 = vcmask 1046528   ;;  %vm131_vm1 = vcmask 523264   ;;  %vm24_vm2 = vcmask 1040384   ;;  %s597_s0 = inlined_call_operand.vmem [shape: f32[1,32,64], index: 0, kind: input, shape index: {}]   ;;  %s598_s1 = inlined_call_operand.vmem [shape: f32[192,128], index: 1, kind: input, shape index: {}]   ;;  %s599_s2 = inlined_call_operand.vmem [shape: f32[1,128], index: 2, kind: input, shape index: {}]   ;;  %s600_s3 = inlined_call_operand.vmem [shape: f32[1,32,128], index: 3, kind: output, shape index: {0}]   ;;  %s601_s4 = inlined_call_operand.vmem [shape: f32[1,1,256], index: 4, kind: output, shape index: {1}]  }
   0x1   :  { %v425_v0 = vld [vmem:[%s597_s0] sm:$0xff]  ;;  %v17_v1 = vld [vmem:[%s597_s0 + $0x8] sm:$0xff]  ;;  %v18_v2 = vld [vmem:[%s597_s0 + $0x10] sm:$0xff]  ;;  %326 = vmatprep.subr.bf16.mxu0 %v394_v3  ;;  %362 = vmatprep.subr.bf16.mxu1 %v394_v3  ;;  %v50_v57 = vlaneseq }
   0x2   :  { %119 = vrot.lane.b32.xlu0 %v425_v0, %s395_s21  ;;  %v38_v4 = vrot.slane %v425_v0, 1  ;;  %v41_v5 = vrot.slane %v18_v2, 1  ;;  %v19_v6 = vld [vmem:[%s597_s0 + $0x18] sm:$0xff]  ;;  %v136_v7 = vld [vmem:[%s598_s1] sm:$0xff]  ;;  %v389_v8 = vpack.i.bf16 %v18_v2, %v17_v1  ;;  %v137_v10 = vld [vmem:[%s598_s1 + $0x8] sm:$0xff]  ;;  %v39_v13 = vrot.slane %v17_v1, 1 }
   0x3   :  { %125 = vrot.lane.b32.xlu1 %v19_v6, %s395_s21  ;;  %v43_v9 = vrot.slane %v19_v6, 1  ;;  %v138_v11 = vld [vmem:[%s598_s1 + $0x10] sm:$0xff]  ;;  %v139_v12 = vld [vmem:[%s598_s1 + $0x18] sm:$0xff]  ;;  %v327_v14 = vpack.c.bf16 %v137_v10, %v136_v7  ;;  %v28_v15 = vrot.slane %v18_v2, 7  ;;  %v25_v19 = vrot.slane %v425_v0, 7  ;;  %v140_v20 = vld [vmem:[%s598_s1 + $0x20] sm:$0xff] }
   0x4   :  { %v40_v16 = vsel %vm37_vm0, %v38_v4, %v39_v13  ;;  %v454_v17 = vsel %vm37_vm0, %v39_v13, %v41_v5  ;;  %v330_v18 = vpack.c.bf16 %v139_v12, %v138_v11  ;;  %v141_v21 = vld [vmem:[%s598_s1 + $0x28] sm:$0xff]  ;;  %v26_v23 = vrot.slane %v17_v1, 7  ;;  %v142_v28 = vld [vmem:[%s598_s1 + $0x30] sm:$0xff]  ;;  %v143_v29 = vld [vmem:[%s598_s1 + $0x38] sm:$0xff] }
   0x5   :  { %328 = vmatpush1.bf16.msra.mxu0 %v327_v14  ;;  %374 = vmatpush1.bf16.msra.mxu1 %v327_v14  ;;  %v44_v22 = vsel %vm37_vm0, %v41_v5, %v43_v9  ;;  %v30_v24 = vrot.slane %v19_v6, 7  ;;  %v333_v27 = vpack.c.bf16 %v141_v21, %v140_v20  ;;  %v484_v30 = vsel %vm37_vm0, %v43_v9, 0.0  ;;  %v144_v33 = vld [vmem:[%s598_s1 + $0x40] sm:$0xff]  ;;  %v145_v34 = vld [vmem:[%s598_s1 + $0x48] sm:$0xff]  ;;  %v146_v36 = vld [vmem:[%s598_s1 + $0x50] sm:$0xff] }
   0x6   :  { %390 = vrot.lane.b32.xlu0 %v389_v8, %s395_s21  ;;  %329 = vmatprep.subr.bf16.mxu0 %v394_v3  ;;  %v471_v25 = vsel %vm24_vm2, %v25_v19, %v26_v23  ;;  %v474_v26 = vsel %vm24_vm2, %v26_v23, %v28_v15  ;;  %v336_v32 = vpack.c.bf16 %v143_v29, %v142_v28  ;;  %v147_v37 = vld [vmem:[%s598_s1 + $0x58] sm:$0xff]  ;;  %v148_v39 = vld [vmem:[%s598_s1 + $0x60] sm:$0xff]  ;;  %v149_v40 = vld [vmem:[%s598_s1 + $0x68] sm:$0xff]  ;;  %v557_v58 = vshrl.u32 %v50_v57, 7 }
   0x7   :  { %363 = vmatprep.subr.bf16.mxu1 %v394_v3  ;;  %322 = vmatprep.mubr.msk.f32.mxu0 %vm131_vm1, %v40_v16  ;;  %v488_v31 = vsel %vm24_vm2, %v28_v15, %v30_v24  ;;  %v339_v35 = vpack.c.bf16 %v145_v34, %v144_v33  ;;  %v342_v38 = vpack.c.bf16 %v147_v37, %v146_v36  ;;  %v150_v42 = vld [vmem:[%s598_s1 + $0x70] sm:$0xff]  ;;  %v151_v43 = vld [vmem:[%s598_s1 + $0x78] sm:$0xff]  ;;  %v152_v45 = vld [vmem:[%s598_s1 + $0x80] sm:$0xff]  ;;  %v36_v63 = vsel %vm24_vm2, 0.0, %v25_v19 }
   0x8   :  { %324 = vmatprep.mubr.msk.f32.mxu1 %vm131_vm1, %v44_v22  ;;  %v345_v41 = vpack.c.bf16 %v149_v40, %v148_v39  ;;  %v348_v44 = vpack.c.bf16 %v151_v43, %v150_v42  ;;  %v153_v46 = vld [vmem:[%s598_s1 + $0x88] sm:$0xff]  ;;  %v154_v48 = vld [vmem:[%s598_s1 + $0x90] sm:$0xff]  ;;  %v155_v49 = vld [vmem:[%s598_s1 + $0x98] sm:$0xff]  ;;  %v52_v59 = vadd.s32 8, %v557_v58  ;;  %v59_v60 = vand.u32 15, %v557_v58 }
   0x9   :  { %331 = vmatpush1.bf16.msra.mxu0 %v330_v18  ;;  %375 = vmatpush1.bf16.msra.mxu1 %v330_v18  ;;  %v351_v47 = vpack.c.bf16 %v153_v46, %v152_v45  ;;  %v354_v50 = vpack.c.bf16 %v155_v49, %v154_v48  ;;  %v156_v51 = vld [vmem:[%s598_s1 + $0xa0] sm:$0xff]  ;;  %v157_v52 = vld [vmem:[%s598_s1 + $0xa8] sm:$0xff]  ;;  %v158_v54 = vld [vmem:[%s598_s1 + $0xb0] sm:$0xff]  ;;  %v53_v62 = vadd.s32 16, %v557_v58  ;;  %v54_v1 = vadd.s32 24, %v557_v58 }
   0xa   :  { %332 = vmatprep.subr.bf16.mxu0 %v394_v3  ;;  %364 = vmatprep.subr.bf16.mxu1 %v394_v3  ;;  %v357_v53 = vpack.c.bf16 %v157_v52, %v156_v51  ;;  %v159_v55 = vld [vmem:[%s598_s1 + $0xb8] sm:$0xff]  ;;  %v66_v61 = vand.u32 15, %v52_v59  ;;  %vm103_vm3 = vcmp.ne.s32.totalorder %v59_v60, 0  ;;  %v321_v16 = vld [vmem:[%s599_s2] ss:$0 sm:$0xff]  ;;  %vm310_vm7 = vcmp.lt.s32.totalorder %v50_v57, 256 }
   0xb   :  { %v360_v56 = vpack.c.bf16 %v159_v55, %v158_v54  ;;  %v73_v2 = vand.u32 15, %v53_v62  ;;  %v80_v4 = vand.u32 15, %v54_v1 }
   0xc   :  { %vm112_vm4 = vcmp.ne.s32.totalorder %v66_v61, 15 }
   0xd   :  { %334 = vmatpush1.bf16.msra.mxu0 %v333_v27  ;;  %376 = vmatpush1.bf16.msra.mxu1 %v333_v27  ;;  %v116_v6 = vsel %vm112_vm4, %v454_v17, 0.0  ;;  %vm105_vm5 = vcmp.ne.s32.totalorder %v73_v2, 0  ;;  %vm114_vm6 = vcmp.ne.s32.totalorder %v80_v4, 15 }
   0xe   :  { %335 = vmatprep.subr.bf16.mxu0 %v394_v3  ;;  %365 = vmatprep.subr.bf16.mxu1 %v394_v3  ;;  %v109_v8 = vsel %vm105_vm5, %v474_v26, 0.0  ;;  %v118_v12 = vsel %vm114_vm6, %v484_v30, 0.0 }
  0x11   :  { %337 = vmatpush1.bf16.msra.mxu0 %v336_v32  ;;  %377 = vmatpush1.bf16.msra.mxu1 %v336_v32 }
  0x12   :  { %338 = vmatprep.subr.bf16.mxu0 %v394_v3  ;;  %366 = vmatprep.subr.bf16.mxu1 %v394_v3 }
  0x15   :  { %340 = vmatpush1.bf16.msra.mxu0 %v339_v35  ;;  %378 = vmatpush1.bf16.msra.mxu1 %v339_v35 }
  0x16   :  { %341 = vmatprep.subr.bf16.mxu0 %v394_v3  ;;  %367 = vmatprep.subr.bf16.mxu1 %v394_v3 }
  0x19   :  { %343 = vmatpush1.bf16.msra.mxu0 %v342_v38  ;;  %379 = vmatpush1.bf16.msra.mxu1 %v342_v38 }
  0x1a   :  { %344 = vmatprep.subr.bf16.mxu0 %v394_v3  ;;  %368 = vmatprep.subr.bf16.mxu1 %v394_v3 }
  0x1d   :  { %346 = vmatpush1.bf16.msra.mxu0 %v345_v41  ;;  %380 = vmatpush1.bf16.msra.mxu1 %v345_v41 }
  0x1e   :  { %347 = vmatprep.subr.bf16.mxu0 %v394_v3  ;;  %369 = vmatprep.subr.bf16.mxu1 %v394_v3 }
  0x21   :  { %349 = vmatpush1.bf16.msra.mxu0 %v348_v44  ;;  %381 = vmatpush1.bf16.msra.mxu1 %v348_v44  ;;  %v396_v44 = vmov 1966171168  }
  0x22   :  { %350 = vmatprep.subr.bf16.mxu0 %v394_v3  ;;  %370 = vmatprep.subr.bf16.mxu1 %v394_v3  ;;  %v294_v45 = vunpack.c.l.s4 %v396_v44 }
  0x25   :  { %352 = vmatpush1.bf16.msra.mxu0 %v351_v47  ;;  %382 = vmatpush1.bf16.msra.mxu1 %v351_v47 }
  0x26   :  { %353 = vmatprep.subr.bf16.mxu0 %v394_v3  ;;  %371 = vmatprep.subr.bf16.mxu1 %v394_v3 }
  0x29   :  { %355 = vmatpush1.bf16.msra.mxu0 %v354_v50  ;;  %383 = vmatpush1.bf16.msra.mxu1 %v354_v50  ;;  %v295_v50 = vunpack.c.0.s8 %v294_v45 }
  0x2a   :  { %356 = vmatprep.subr.bf16.mxu0 %v394_v3  ;;  %372 = vmatprep.subr.bf16.mxu1 %v394_v3 }
  0x2b   :  { %v298_v54 = vsub.s32 %v295_v50, %v557_v58 }
  0x2d   :  { %358 = vmatpush1.bf16.msra.mxu0 %v357_v53  ;;  %384 = vmatpush1.bf16.msra.mxu1 %v357_v53 }
  0x2e   :  { %359 = vmatprep.subr.bf16.mxu0 %v394_v3  ;;  %373 = vmatprep.subr.bf16.mxu1 %v394_v3  ;;  %v107_v3 = vsel %vm103_vm3, %v36_v63, 0.0 }
  0x31   :  { %361 = vmatpush1.bf16.msra.mxu0 %v360_v56  ;;  %385 = vmatpush1.bf16.msra.mxu1 %v360_v56 }
  0x74   :  { %v120_v5 = vpop.permute.xlu0 %119 }
  0x75   :  { %v132_v7 = vsel %vm131_vm1, %v107_v3, %v120_v5  ;;  %v126_v11 = vpop.permute.xlu1 %125 }
  0x76   :  { %244 = vmatmul.mubr.f32.vlgmr.msra.gmra.mrb[0].mxu0 %v132_v7  ;;  %v135_v15 = vsel %vm131_vm1, %v488_v31, %v126_v11 }
  0x77   :  { %323 = vmatprep.mubr.msk.f32.mxu0 %vm131_vm1, %v116_v6 }
  0x78   :  { %v391_v0 = vpop.permute.xlu0 %390 }
  0x79   :  { %v393_v9 = vunpack.i.h.bf16 %v391_v0  ;;  %v392_v10 = vunpack.i.l.bf16 %v391_v0 }
  0x7b   :  { %v133_v13 = vsel %vm131_vm1, %v471_v25, %v392_v10  ;;  %v134_v14 = vsel %vm131_vm1, %v109_v8, %v393_v9 }
  0x7c   :  { %249 = vmatmul.mubr.f32.gmra.mrb[2].mxu0 %v133_v13  ;;  %254 = vmatmul.mubr.f32.vlgmr.msra.gmra.mrb[0].mxu1 %v134_v14 }
  0x7d   :  { %325 = vmatprep.mubr.msk.f32.mxu1 %vm131_vm1, %v118_v12 }
  0x80   :  { %259 = vmatmul.mubr.f32.gmra.mrb[2].mxu1 %v135_v15 }
 0x149   :  { %v245_v17 = vpop.f32.mrb[0].mxu0 }
 0x14a   :  { %v246_v18 = vadd.f32 %v321_v16, %v245_v17  ;;  %v247_v19 = vpop.f32.mrb[1].mxu0 }
 0x14c   :  { %264 = vst [vmem:[%s600_s3] sm:$0xff] %v246_v18  ;;  %v277_v26 = vmul.f32 %v246_v18, %v246_v18 }
 0x14f   :  { %v250_v20 = vpop.f32.mrb[2].mxu0  ;;  %v255_v21 = vpop.f32.mrb[0].mxu1 }
 0x150   :  { %v251_v22 = vadd.f32 %v321_v16, %v250_v20  ;;  %v256_v23 = vadd.f32 %v321_v16, %v255_v21  ;;  %v252_v24 = vpop.f32.mrb[3].mxu0  ;;  %v257_v25 = vpop.f32.mrb[1].mxu1 }
 0x152   :  { %265 = vst [vmem:[%s600_s3 + $0x8] sm:$0xff] %v251_v22  ;;  %v268_v27 = vadd.f32 %v251_v22, %v246_v18  ;;  %v278_v28 = vmul.f32 %v251_v22, %v251_v22  ;;  %266 = vst [vmem:[%s600_s3 + $0x10] sm:$0xff] %v256_v23  ;;  %v279_v32 = vmul.f32 %v256_v23, %v256_v23 }
 0x153   :  { %v260_v29 = vpop.f32.mrb[2].mxu1 }
 0x154   :  { %v281_v30 = vadd.f32 %v278_v28, %v277_v26  ;;  %v269_v31 = vadd.f32 %v268_v27, %v256_v23  ;;  %v261_v33 = vadd.f32 %v321_v16, %v260_v29  ;;  %v262_v34 = vpop.f32.mrb[3].mxu1 }
 0x156   :  { %v282_v35 = vadd.f32 %v281_v30, %v279_v32  ;;  %267 = vst [vmem:[%s600_s3 + $0x18] sm:$0xff] %v261_v33  ;;  %v270_v36 = vadd.f32 %v269_v31, %v261_v33  ;;  %v280_v37 = vmul.f32 %v261_v33, %v261_v33 }
 0x158   :  { %v271_v38 = vrot.slane %v270_v36, 4  ;;  %v283_v39 = vadd.f32 %v282_v35, %v280_v37 }
 0x15a   :  { %v272_v40 = vadd.f32 %v271_v38, %v270_v36  ;;  %v284_v41 = vrot.slane %v283_v39, 4 }
 0x15c   :  { %v273_v42 = vrot.slane %v272_v40, 2  ;;  %v285_v43 = vadd.f32 %v284_v41, %v283_v39 }
 0x15e   :  { %v274_v46 = vadd.f32 %v273_v42, %v272_v40  ;;  %v286_v47 = vrot.slane %v285_v43, 2 }
 0x160   :  { %v275_v48 = vrot.slane %v274_v46, 1  ;;  %v287_v49 = vadd.f32 %v286_v47, %v285_v43 }
 0x162   :  { %v288_v51 = vrot.slane %v287_v49, 1  ;;  %v276_v52 = vadd.f32 %v275_v48, %v274_v46 }
 0x164   :  { %v289_v53 = vadd.f32 %v288_v51, %v287_v49 }
 0x166   :  { %v292_v55 = vcombine.low %v276_v52, %v289_v53 }
 0x168   :  { %v299_v56 = vrot.slane %v292_v55, %v298_v54 }
 0x16a   :  { %v306_v59 = vrot.slane %v299_v56, %v298_v54 }
 0x16c   :  { %312 = vst.msk [vmem:[%s601_s4] sm:$0x3] %vm310_vm7, %v306_v59 }

</bundles_post_ra>
